<compile_context>
chip_gen: v7x
topology: tpu7x:2x2x1
jax: 0.10.0
libtpu: 0.0.40
codegen_flags: <defaults>
</compile_context>

<pallas_src>
import jax
import jax.numpy as jnp
from jax import lax
from jax.experimental import pallas as pl
from jax.experimental.pallas import tpu as pltpu


def _round_up(x, m):
    return (x + m - 1) // m * m


def _vmem_budget_bytes():
    """~3/4 of physical per-core VMEM (leaves headroom for Mosaic scratch)."""
    try:
        cap = int(pltpu.get_tpu_info().vmem_capacity_bytes)
    except Exception:
        cap = 64 << 20          # conservative fallback (v7x-sized)
    return (cap * 3) // 4


def _valid_tiles(n_pad):
    """Node-tile candidates: full dim, or lane-aligned divisors of n_pad."""
    if n_pad <= 128:
        return [n_pad]
    return [t for t in range(128, n_pad + 1, 128) if n_pad % t == 0]


def _pick_node_tile(tiles, n_pad, n_in, n_h, budget):
    """Largest tile whose double-buffered blocks + resident scratch fit."""
    fixed = 4 * (3 * n_h * n_pad            # f32 accumulator scratch
                 + 2 * 2 * n_pad            # double-buffered (2, Np) f32 output
                 + n_h * n_in + 3 * n_h + n_h * n_h)   # resident weights
    for t in sorted(tiles, reverse=True):
        per_step = 2 * 4 * (n_pad * t + 3 * t * n_in)   # dbl-buf adj + 3 seq (f32)
        if fixed + per_step <= budget:
            return t
    return min(tiles)


def dgi_forward(seq1, seq2, seq3, adj,
                w_gcn, b_gcn, prelu_a, w_bil, b_bil,
                *, compute_dtype=jnp.bfloat16, node_tile=None):
    """seq*: (B, N, n_in) f32, adj: (B, N, N) f32 (row-normalized, dense).
    w_gcn: (n_h, n_in), b_gcn: (n_h,), prelu_a: scalar (shared PReLU slope),
    w_bil: (n_h, n_h) (squeezed nn.Bilinear weight), b_bil: scalar.
    Returns logits (B, 2N) float32."""
    B, N, n_in = seq1.shape
    n_h = w_gcn.shape[0]
    cdt = jnp.dtype(compute_dtype)

    # --- optional lane padding of the node axis (only when not 128-aligned
    #     and large enough to matter); padded entries are zero and masked out.
    n_pad = _round_up(N, 128) if (N > 128 and N % 128) else N
    if n_pad != N:
        p = n_pad - N
        seq1 = jnp.pad(seq1, ((0, 0), (0, p), (0, 0)))
        seq2 = jnp.pad(seq2, ((0, 0), (0, p), (0, 0)))
        seq3 = jnp.pad(seq3, ((0, 0), (0, p), (0, 0)))
        adj = jnp.pad(adj, ((0, 0), (0, p), (0, p)))

    seq1 = jnp.asarray(seq1, jnp.float32)
    seq2 = jnp.asarray(seq2, jnp.float32)
    seq3 = jnp.asarray(seq3, jnp.float32)
    adj = jnp.asarray(adj, jnp.float32)          # original layout, cast in-kernel

    # --- tiny parameters
    w = jnp.asarray(w_gcn, jnp.float32)                              # (n_h, n_in)
    bias3 = jnp.tile(jnp.asarray(b_gcn, jnp.float32).reshape(-1), 3)
    bias3 = bias3.reshape(3 * n_h, 1)                                # (3n_h, 1)
    wb = jnp.asarray(w_bil, jnp.float32)                             # (n_h, n_h)
    prelu_a = jnp.asarray(prelu_a, jnp.float32).reshape(1)
    disc_b = jnp.asarray(b_bil, jnp.float32).reshape(1)

    # --- node-contraction tile selection (per-generation VMEM budget)
    budget = _vmem_budget_bytes()
    tiles = _valid_tiles(n_pad)
    if node_tile is None:
        tm = _pick_node_tile(tiles, n_pad, n_in, n_h, budget)
    else:
        want = int(node_tile)
        tm = max([t for t in tiles if t <= want], default=min(tiles))
    kt = n_pad // tm

    dn_t = (((1,), (1,)), ((), ()))        # contract last dims: A @ B^T on the MXU

    def kernel(prelu_ref, bb_ref,                       # SMEM scalars
               seq1_ref, seq2_ref, seq3_ref,            # (1, tm, n_in) f32
               adj_ref,                                 # (1, n_pad, tm) f32
               w_ref, bias_ref, wb_ref,                 # weights (f32)
               out_ref,                                 # (1, 2, n_pad) f32
               fts_ref,                                 # (3n_h, tm) compute dtype
               acc_ref):                                # (3n_h, n_pad) f32
        k = pl.program_id(1)

        @pl.when(k == 0)
        def _init():
            acc_ref[...] = jnp.zeros_like(acc_ref)

        # Feature transforms for this node tile: fts^T = W . seq_tile^T,
        # computed on the untransposed (tm, n_in) block (no host transpose)
        # and written straight in the compute dtype at static sublane offsets.
        wk = w_ref[...].astype(cdt)                                     # (n_h, n_in)
        fts_ref[0:n_h, :] = lax.dot_general(
            wk, seq1_ref[0].astype(cdt), dn_t,
            preferred_element_type=jnp.float32).astype(cdt)
        fts_ref[n_h:2 * n_h, :] = lax.dot_general(
            wk, seq2_ref[0].astype(cdt), dn_t,
            preferred_element_type=jnp.float32).astype(cdt)
        fts_ref[2 * n_h:, :] = lax.dot_general(
            wk, seq3_ref[0].astype(cdt), dn_t,
            preferred_element_type=jnp.float32).astype(cdt)

        # Fused propagation for all three GCN inputs over this contraction
        # tile: h^T += fts_tile @ adj[:, tile]^T (adj cast in-kernel).
        adj_blk = adj_ref[0].astype(cdt)                                # (n_pad, tm)
        acc_ref[...] += lax.dot_general(
            fts_ref[...], adj_blk, dn_t,
            preferred_element_type=jnp.float32)                         # (3n_h, n_pad)

        @pl.when(k == kt - 1)
        def _finalize():
            a = prelu_ref[0]
            bb = bb_ref[0]
            h = acc_ref[...] + bias_ref[...]                # (3n_h, n_pad)
            h = jnp.where(h > 0, h, a * h)                  # PReLU (shared slope)
            h1 = h[:n_h]
            h2m = (h[n_h:2 * n_h] + h[2 * n_h:]) * 0.5

            # AvgReadout over the real node lanes only, then sigmoid.
            if n_pad == N:
                row_sum = jnp.sum(h1, axis=1, keepdims=True)
            else:
                lane = lax.broadcasted_iota(jnp.int32, h1.shape, 1)
                row_sum = jnp.sum(jnp.where(lane < N, h1, 0.0),
                                  axis=1, keepdims=True)
            c = jax.nn.sigmoid(row_sum * (1.0 / N))         # (n_h, 1)

            # Bilinear(n_h, n_h, 1) collapses to a mat-vec u = W_bil @ c,
            # then a sublane reduce of h^T * u.
            u = jnp.dot(wb_ref[...], c, preferred_element_type=jnp.float32)
            u_b = jnp.broadcast_to(u, h1.shape)             # hoisted once

            # Two lane-dense (1, n_pad) stores (no 1-D concat / relayout).
            out_ref[0, 0:1, :] = jnp.sum(h1 * u_b, axis=0, keepdims=True) + bb
            out_ref[0, 1:2, :] = jnp.sum(h2m * u_b, axis=0, keepdims=True) + bb

    smem = pl.BlockSpec(memory_space=pltpu.MemorySpace.SMEM)
    in_specs = [
        smem, smem,                                                  # prelu_a, b_bil
        pl.BlockSpec((1, tm, n_in), lambda b, k: (b, k, 0)),         # seq1 tile
        pl.BlockSpec((1, tm, n_in), lambda b, k: (b, k, 0)),         # seq2 tile
        pl.BlockSpec((1, tm, n_in), lambda b, k: (b, k, 0)),         # seq3 tile
        pl.BlockSpec((1, n_pad, tm), lambda b, k: (b, 0, k)),        # adj column tile
        pl.BlockSpec((n_h, n_in), lambda b, k: (0, 0)),              # W_gcn
        pl.BlockSpec((3 * n_h, 1), lambda b, k: (0, 0)),             # gcn bias (x3)
        pl.BlockSpec((n_h, n_h), lambda b, k: (0, 0)),               # bilinear weight
    ]
    out_spec = pl.BlockSpec((1, 2, n_pad), lambda b, k: (b, 0, 0))

    flops = B * (3 * 2 * n_pad * n_in * n_h          # feature transforms
                 + 2 * n_pad * n_pad * 3 * n_h       # fused propagation
                 + 2 * n_h * n_h                     # bilinear mat-vec
                 + 2 * 2 * n_pad * n_h)              # score reductions
    bytes_accessed = (3 * B * n_pad * n_in * 4 + B * n_pad * n_pad * 4
                      + (n_h * n_in + 3 * n_h + n_h * n_h) * 4
                      + B * 2 * n_pad * 4)

    out = pl.pallas_call(
        kernel,
        out_shape=jax.ShapeDtypeStruct((B, 2, n_pad), jnp.float32),
        grid_spec=pltpu.PrefetchScalarGridSpec(
            num_scalar_prefetch=0,
            grid=(B, kt),
            in_specs=in_specs,
            out_specs=out_spec,
            scratch_shapes=[pltpu.VMEM((3 * n_h, tm), cdt),
                            pltpu.VMEM((3 * n_h, n_pad), jnp.float32)]),
        compiler_params=pltpu.CompilerParams(
            dimension_semantics=("parallel", "arbitrary"),
            vmem_limit_bytes=int(budget)),
        cost_estimate=pl.CostEstimate(
            flops=int(flops),
            transcendentals=int(B * n_h),
            bytes_accessed=int(bytes_accessed)),
    )(prelu_a, disc_b, seq1, seq2, seq3, adj, w, bias3, wb)

    if n_pad != N:
        out = out[:, :, :N]
    # (B, 2, N) -> (B, 2N): contiguous reshape, matches concat([sc1, sc2], 1).
    return out.reshape(B, 2 * N)


def _xavier_uniform(key, shape, fan_in, fan_out):
    bound = (6.0 / (fan_in + fan_out)) ** 0.5
    return jax.random.uniform(key, shape, jnp.float32, -bound, bound)


def dgi_reference(seq1, seq2, seq3, adj, w_gcn, b_gcn, prelu_a, w_bil, b_bil):
    # Pure-JAX f32 reference mirroring the PyTorch forward.
    def gcn(seq):
        fts = jnp.einsum('bnf,hf->bnh', seq, w_gcn)
        out = jnp.einsum('bnm,bmh->bnh', adj, fts) + b_gcn
        return jnp.where(out > 0, out, prelu_a * out)
    h1, h2, h3 = gcn(seq1), gcn(seq2), gcn(seq3)
    c = jax.nn.sigmoid(jnp.mean(h1, axis=1))          # (B, n_h)
    h2m = (h2 + h3) / 2
    def disc(h):
        return jnp.einsum('bnh,hk,bk->bn', h, w_bil, c) + b_bil
    return jnp.concatenate([disc(h1), disc(h2m)], axis=1)


def _make_inputs(key, B, N, n_in, n_h):
    ks = jax.random.split(key, 6)
    seq1 = jax.random.normal(ks[0], (B, N, n_in), jnp.float32)
    seq2 = jax.random.normal(ks[1], (B, N, n_in), jnp.float32)
    seq3 = jax.random.normal(ks[2], (B, N, n_in), jnp.float32)
    adj = jax.random.uniform(ks[3], (B, N, N), jnp.float32)
    adj = adj / jnp.sum(adj, axis=-1, keepdims=True)   # row-normalized adjacency
    w_gcn = _xavier_uniform(ks[4], (n_h, n_in), fan_in=n_in, fan_out=n_h)
    b_gcn = jnp.linspace(-0.1, 0.1, n_h, dtype=jnp.float32)
    prelu_a = jnp.float32(0.25)                        # PReLU default slope
    w_bil = _xavier_uniform(ks[5], (n_h, n_h), fan_in=n_h * n_h, fan_out=n_h)
    b_bil = jnp.float32(0.03)
    return seq1, seq2, seq3, adj, w_gcn, b_gcn, prelu_a, w_bil, b_bil


if __name__ == "__main__":
    B, N, n_in, n_h = 2, 16, 8, 32
    args = _make_inputs(jax.random.PRNGKey(0), B, N, n_in, n_h)
    ref = dgi_reference(*args)

    # Exact path: f32 MXU operands vs. the pure-JAX reference (tight tolerance).
    out_f32 = jax.block_until_ready(
        dgi_forward(*args, compute_dtype=jnp.float32))
    assert out_f32.shape == (B, 2 * N)
    assert jnp.allclose(out_f32, ref, atol=1e-4, rtol=1e-4), "f32 kernel mismatch"

    # Fast path (default): bf16 MXU operands with f32 accumulation.
    out_bf16 = jax.block_until_ready(dgi_forward(*args))
    assert out_bf16.shape == (B, 2 * N)
    assert jnp.allclose(out_bf16, ref, atol=5e-2, rtol=5e-2), "bf16 kernel mismatch"

    # Padded + tiled path: N not lane-aligned, forced 2 contraction tiles
    # (exercises lane padding, the masked readout and the k-axis accumulator).
    B2, N2 = 2, 160
    args2 = _make_inputs(jax.random.PRNGKey(1), B2, N2, n_in, n_h)
    ref2 = dgi_reference(*args2)
    out2 = jax.block_until_ready(
        dgi_forward(*args2, compute_dtype=jnp.float32, node_tile=128))
    assert out2.shape == (B2, 2 * N2)
    assert jnp.allclose(out2, ref2, atol=1e-3, rtol=1e-3), "tiled kernel mismatch"

    print("KERNEL_OK")
</pallas_src>

<mosaic_0001>
module attributes {stable_mosaic.version = 11 : i64} {
  func.func @kernel(%arg0: i32, %arg1: i32, %arg2: memref<1xf32, #tpu.memory_space<smem>>, %arg3: memref<1xf32, #tpu.memory_space<smem>>, %arg4: memref<1x16x8xf32, #tpu.memory_space<vmem>>, %arg5: memref<1x16x8xf32, #tpu.memory_space<vmem>>, %arg6: memref<1x16x8xf32, #tpu.memory_space<vmem>>, %arg7: memref<1x16x16xf32, #tpu.memory_space<vmem>>, %arg8: memref<32x8xf32, #tpu.memory_space<vmem>>, %arg9: memref<96x1xf32, #tpu.memory_space<vmem>>, %arg10: memref<32x32xf32, #tpu.memory_space<vmem>>, %arg11: memref<1x2x16xf32, #tpu.memory_space<vmem>>, %arg12: memref<96x16xf32, #tpu.memory_space<vmem>>, %arg13: memref<96x16xf32, #tpu.memory_space<vmem>>) attributes {dimension_semantics = [#tpu.dimension_semantics<parallel>, #tpu.dimension_semantics<arbitrary>], iteration_bounds = array<i64: 2, 1>, scalar_prefetch = 0 : i64, scratch_operands = 2 : i64, tpu.core_type = #tpu.core_type<tc>, window_params = [{transform_indices = @transform_0, window_bounds = array<i64: 1>}, {transform_indices = @transform_1, window_bounds = array<i64: 1>}, {transform_indices = @transform_2, window_bounds = array<i64: 1, 16, 8>}, {transform_indices = @transform_3, window_bounds = array<i64: 1, 16, 8>}, {transform_indices = @transform_4, window_bounds = array<i64: 1, 16, 8>}, {transform_indices = @transform_5, window_bounds = array<i64: 1, 16, 16>}, {pipeline_mode = #tpu.pipeline_mode<synchronous>, transform_indices = @transform_6, window_bounds = array<i64: 32, 8>}, {pipeline_mode = #tpu.pipeline_mode<synchronous>, transform_indices = @transform_7, window_bounds = array<i64: 96, 1>}, {pipeline_mode = #tpu.pipeline_mode<synchronous>, transform_indices = @transform_8, window_bounds = array<i64: 32, 32>}, {transform_indices = @transform_9, window_bounds = array<i64: 1, 2, 16>}]} {
    %c0_i32 = arith.constant 0 : i32
    %0 = arith.cmpi eq, %arg1, %c0_i32 : i32
    %1 = arith.extui %0 : i1 to i32
    %c0_i32_0 = arith.constant 0 : i32
    %2 = arith.cmpi ne, %1, %c0_i32_0 : i32
    scf.if %2 {
      %cst_29 = arith.constant 0.000000e+00 : f32
      %26 = vector.broadcast %cst_29 : f32 to vector<96x16xf32>
      %c0_30 = arith.constant 0 : index
      %c0_31 = arith.constant 0 : index
      %27 = vector.load %arg13[%c0_30, %c0_31] : memref<96x16xf32, #tpu.memory_space<vmem>>, vector<96x16xf32>
      tpu.vector_store %arg13[%c0_30, %c0_31], %26 {strides = array<i32>} : memref<96x16xf32, #tpu.memory_space<vmem>>, vector<96x16xf32>,
    } else {
    }
    %c0 = arith.constant 0 : index
    %c0_1 = arith.constant 0 : index
    %3 = vector.load %arg8[%c0, %c0_1] : memref<32x8xf32, #tpu.memory_space<vmem>>, vector<32x8xf32>
    %c0_2 = arith.constant 0 : index
    %c0_3 = arith.constant 0 : index
    %c0_4 = arith.constant 0 : index
    %4 = vector.load %arg4[%c0_2, %c0_3, %c0_4] : memref<1x16x8xf32, #tpu.memory_space<vmem>>, vector<1x16x8xf32>
    %5 = vector.shape_cast %4 : vector<1x16x8xf32> to vector<16x8xf32>
    %cst = arith.constant dense<0.000000e+00> : vector<32x16xf32>
    %6 = tpu.matmul %3, %5, %cst {dimension_numbers = #tpu.dot_dimension_numbers<[1], [1], [0], [0], [0, 0, 1, 0], [], []>} : vector<32x8xf32>, vector<16x8xf32>, vector<32x16xf32> -> vector<32x16xf32>
    %c0_5 = arith.constant 0 : index
    %c0_6 = arith.constant 0 : index
    %7 = vector.load %arg12[%c0_5, %c0_6] : memref<96x16xf32, #tpu.memory_space<vmem>>, vector<32x16xf32>
    tpu.vector_store %arg12[%c0_5, %c0_6], %6 {strides = array<i32>} : memref<96x16xf32, #tpu.memory_space<vmem>>, vector<32x16xf32>,
    %c0_7 = arith.constant 0 : index
    %c0_8 = arith.constant 0 : index
    %c0_9 = arith.constant 0 : index
    %8 = vector.load %arg5[%c0_7, %c0_8, %c0_9] : memref<1x16x8xf32, #tpu.memory_space<vmem>>, vector<1x16x8xf32>
    %9 = vector.shape_cast %8 : vector<1x16x8xf32> to vector<16x8xf32>
    %cst_10 = arith.constant dense<0.000000e+00> : vector<32x16xf32>
    %10 = tpu.matmul %3, %9, %cst_10 {dimension_numbers = #tpu.dot_dimension_numbers<[1], [1], [0], [0], [0, 0, 1, 0], [], []>} : vector<32x8xf32>, vector<16x8xf32>, vector<32x16xf32> -> vector<32x16xf32>
    %c32 = arith.constant 32 : index
    %c0_11 = arith.constant 0 : index
    %11 = vector.load %arg12[%c32, %c0_11] : memref<96x16xf32, #tpu.memory_space<vmem>>, vector<32x16xf32>
    tpu.vector_store %arg12[%c32, %c0_11], %10 {strides = array<i32>} : memref<96x16xf32, #tpu.memory_space<vmem>>, vector<32x16xf32>,
    %c0_12 = arith.constant 0 : index
    %c0_13 = arith.constant 0 : index
    %c0_14 = arith.constant 0 : index
    %12 = vector.load %arg6[%c0_12, %c0_13, %c0_14] : memref<1x16x8xf32, #tpu.memory_space<vmem>>, vector<1x16x8xf32>
    %13 = vector.shape_cast %12 : vector<1x16x8xf32> to vector<16x8xf32>
    %cst_15 = arith.constant dense<0.000000e+00> : vector<32x16xf32>
    %14 = tpu.matmul %3, %13, %cst_15 {dimension_numbers = #tpu.dot_dimension_numbers<[1], [1], [0], [0], [0, 0, 1, 0], [], []>} : vector<32x8xf32>, vector<16x8xf32>, vector<32x16xf32> -> vector<32x16xf32>
    %c64 = arith.constant 64 : index
    %c0_16 = arith.constant 0 : index
    %15 = vector.load %arg12[%c64, %c0_16] : memref<96x16xf32, #tpu.memory_space<vmem>>, vector<32x16xf32>
    tpu.vector_store %arg12[%c64, %c0_16], %14 {strides = array<i32>} : memref<96x16xf32, #tpu.memory_space<vmem>>, vector<32x16xf32>,
    %c0_17 = arith.constant 0 : index
    %c0_18 = arith.constant 0 : index
    %c0_19 = arith.constant 0 : index
    %16 = vector.load %arg7[%c0_17, %c0_18, %c0_19] : memref<1x16x16xf32, #tpu.memory_space<vmem>>, vector<1x16x16xf32>
    %17 = vector.shape_cast %16 : vector<1x16x16xf32> to vector<16x16xf32>
    %c0_20 = arith.constant 0 : index
    %c0_21 = arith.constant 0 : index
    %18 = vector.load %arg13[%c0_20, %c0_21] : memref<96x16xf32, #tpu.memory_space<vmem>>, vector<96x16xf32>
    %c0_22 = arith.constant 0 : index
    %c0_23 = arith.constant 0 : index
    %19 = vector.load %arg12[%c0_22, %c0_23] : memref<96x16xf32, #tpu.memory_space<vmem>>, vector<96x16xf32>
    %cst_24 = arith.constant dense<0.000000e+00> : vector<96x16xf32>
    %20 = tpu.matmul %19, %17, %cst_24 {dimension_numbers = #tpu.dot_dimension_numbers<[1], [1], [0], [0], [0, 0, 1, 0], [], []>} : vector<96x16xf32>, vector<16x16xf32>, vector<96x16xf32> -> vector<96x16xf32>
    %21 = arith.addf %18, %20 : vector<96x16xf32>
    %c0_25 = arith.constant 0 : index
    %c0_26 = arith.constant 0 : index
    %22 = vector.load %arg13[%c0_25, %c0_26] : memref<96x16xf32, #tpu.memory_space<vmem>>, vector<96x16xf32>
    tpu.vector_store %arg13[%c0_25, %c0_26], %21 {strides = array<i32>} : memref<96x16xf32, #tpu.memory_space<vmem>>, vector<96x16xf32>,
    %c0_i32_27 = arith.constant 0 : i32
    %23 = arith.cmpi eq, %arg1, %c0_i32_27 : i32
    %24 = arith.extui %23 : i1 to i32
    %c0_i32_28 = arith.constant 0 : i32
    %25 = arith.cmpi ne, %24, %c0_i32_28 : i32
    scf.if %25 {
      %c0_29 = arith.constant 0 : index
      %26 = memref.load %arg2[%c0_29] : memref<1xf32, #tpu.memory_space<smem>>
      %c0_30 = arith.constant 0 : index
      %27 = memref.load %arg3[%c0_30] : memref<1xf32, #tpu.memory_space<smem>>
      %c0_31 = arith.constant 0 : index
      %c0_32 = arith.constant 0 : index
      %28 = vector.load %arg13[%c0_31, %c0_32] : memref<96x16xf32, #tpu.memory_space<vmem>>, vector<96x16xf32>
      %c0_33 = arith.constant 0 : index
      %c0_34 = arith.constant 0 : index
      %29 = vector.load %arg9[%c0_33, %c0_34] : memref<96x1xf32, #tpu.memory_space<vmem>>, vector<96x1xf32>
      %30 = vector.broadcast %29 : vector<96x1xf32> to vector<96x16xf32>
      %31 = arith.addf %28, %30 : vector<96x16xf32>
      %cst_35 = arith.constant 0.000000e+00 : f32
      %32 = vector.broadcast %cst_35 : f32 to vector<96x16xf32>
      %33 = arith.cmpf ogt, %31, %32 : vector<96x16xf32>
      %34 = vector.broadcast %26 : f32 to vector<96x16xf32>
      %35 = arith.mulf %34, %31 : vector<96x16xf32>
      %36 = arith.select %33, %31, %35 : vector<96x16xi1>, vector<96x16xf32>
      %37 = vector.extract_strided_slice %36 {offsets = [0, 0], sizes = [32, 16], strides = [1, 1]} : vector<96x16xf32> to vector<32x16xf32>
      %38 = vector.extract_strided_slice %36 {offsets = [32, 0], sizes = [32, 16], strides = [1, 1]} : vector<96x16xf32> to vector<32x16xf32>
      %39 = vector.extract_strided_slice %36 {offsets = [64, 0], sizes = [32, 16], strides = [1, 1]} : vector<96x16xf32> to vector<32x16xf32>
      %40 = arith.addf %38, %39 : vector<32x16xf32>
      %cst_36 = arith.constant 5.000000e-01 : f32
      %41 = vector.broadcast %cst_36 : f32 to vector<32x16xf32>
      %42 = arith.mulf %40, %41 : vector<32x16xf32>
      %cst_37 = arith.constant dense<0.000000e+00> : vector<32xf32>
      %43 = vector.multi_reduction <add>, %37, %cst_37 [1] : vector<32x16xf32> to vector<32xf32>
      %44 = vector.shape_cast %43 : vector<32xf32> to vector<32x1xf32>
      %cst_38 = arith.constant 6.250000e-02 : f32
      %45 = vector.broadcast %cst_38 : f32 to vector<32x1xf32>
      %46 = arith.mulf %44, %45 : vector<32x1xf32>
      %47 = arith.negf %46 : vector<32x1xf32>
      %48 = math.exp %47 : vector<32x1xf32>
      %cst_39 = arith.constant 1.000000e+00 : f32
      %49 = vector.broadcast %cst_39 : f32 to vector<32x1xf32>
      %50 = arith.addf %49, %48 : vector<32x1xf32>
      %51 = arith.divf %49, %50 : vector<32x1xf32>
      %c0_40 = arith.constant 0 : index
      %c0_41 = arith.constant 0 : index
      %52 = vector.load %arg10[%c0_40, %c0_41] : memref<32x32xf32, #tpu.memory_space<vmem>>, vector<32x32xf32>
      %cst_42 = arith.constant dense<0.000000e+00> : vector<32x1xf32>
      %53 = tpu.matmul %52, %51, %cst_42 {dimension_numbers = #tpu.dot_dimension_numbers<[1], [0], [0], [1], [0, 0, 1, 1], [], []>} : vector<32x32xf32>, vector<32x1xf32>, vector<32x1xf32> -> vector<32x1xf32>
      %54 = vector.shape_cast %53 : vector<32x1xf32> to vector<32x1xf32>
      %55 = vector.broadcast %54 : vector<32x1xf32> to vector<32x16xf32>
      %56 = arith.mulf %37, %55 : vector<32x16xf32>
      %cst_43 = arith.constant dense<0.000000e+00> : vector<16xf32>
      %57 = vector.multi_reduction <add>, %56, %cst_43 [0] : vector<32x16xf32> to vector<16xf32>
      %58 = vector.shape_cast %57 : vector<16xf32> to vector<1x16xf32>
      %59 = vector.broadcast %27 : f32 to vector<1x16xf32>
      %60 = arith.addf %58, %59 : vector<1x16xf32>
      %c0_44 = arith.constant 0 : index
      %c0_45 = arith.constant 0 : index
      %c0_46 = arith.constant 0 : index
      %61 = vector.load %arg11[%c0_44, %c0_45, %c0_46] : memref<1x2x16xf32, #tpu.memory_space<vmem>>, vector<1x1x16xf32>
      %62 = vector.shape_cast %61 : vector<1x1x16xf32> to vector<1x16xf32>
      %63 = vector.shape_cast %60 : vector<1x16xf32> to vector<1x1x16xf32>
      tpu.vector_store %arg11[%c0_44, %c0_45, %c0_46], %63 {strides = array<i32>} : memref<1x2x16xf32, #tpu.memory_space<vmem>>, vector<1x1x16xf32>,
      %64 = arith.mulf %42, %55 : vector<32x16xf32>
      %cst_47 = arith.constant dense<0.000000e+00> : vector<16xf32>
      %65 = vector.multi_reduction <add>, %64, %cst_47 [0] : vector<32x16xf32> to vector<16xf32>
      %66 = vector.shape_cast %65 : vector<16xf32> to vector<1x16xf32>
      %67 = vector.broadcast %27 : f32 to vector<1x16xf32>
      %68 = arith.addf %66, %67 : vector<1x16xf32>
      %c0_48 = arith.constant 0 : index
      %c1 = arith.constant 1 : index
      %c0_49 = arith.constant 0 : index
      %69 = vector.load %arg11[%c0_48, %c1, %c0_49] : memref<1x2x16xf32, #tpu.memory_space<vmem>>, vector<1x1x16xf32>
      %70 = vector.shape_cast %69 : vector<1x1x16xf32> to vector<1x16xf32>
      %71 = vector.shape_cast %68 : vector<1x16xf32> to vector<1x1x16xf32>
      tpu.vector_store %arg11[%c0_48, %c1, %c0_49], %71 {strides = array<i32>} : memref<1x2x16xf32, #tpu.memory_space<vmem>>, vector<1x1x16xf32>,
    } else {
    }
    return
  }
  func.func @transform_0(%arg0: i32, %arg1: i32) -> i32 {
    %c0_i32 = arith.constant 0 : i32
    %c0_i32_0 = arith.constant 0 : i32
    return %c0_i32 : i32
  }
  func.func @transform_1(%arg0: i32, %arg1: i32) -> i32 {
    %c0_i32 = arith.constant 0 : i32
    %c0_i32_0 = arith.constant 0 : i32
    return %c0_i32 : i32
  }
  func.func @transform_2(%arg0: i32, %arg1: i32) -> (i32, i32, i32) {
    %c0_i32 = arith.constant 0 : i32
    %c0_i32_0 = arith.constant 0 : i32
    return %arg0, %arg1, %c0_i32 : i32, i32, i32
  }
  func.func @transform_3(%arg0: i32, %arg1: i32) -> (i32, i32, i32) {
    %c0_i32 = arith.constant 0 : i32
    %c0_i32_0 = arith.constant 0 : i32
    return %arg0, %arg1, %c0_i32 : i32, i32, i32
  }
  func.func @transform_4(%arg0: i32, %arg1: i32) -> (i32, i32, i32) {
    %c0_i32 = arith.constant 0 : i32
    %c0_i32_0 = arith.constant 0 : i32
    return %arg0, %arg1, %c0_i32 : i32, i32, i32
  }
  func.func @transform_5(%arg0: i32, %arg1: i32) -> (i32, i32, i32) {
    %c0_i32 = arith.constant 0 : i32
    %c0_i32_0 = arith.constant 0 : i32
    return %arg0, %c0_i32, %arg1 : i32, i32, i32
  }
  func.func @transform_6(%arg0: i32, %arg1: i32) -> (i32, i32) {
    %c0_i32 = arith.constant 0 : i32
    %c0_i32_0 = arith.constant 0 : i32
    %c0_i32_1 = arith.constant 0 : i32
    return %c0_i32, %c0_i32_0 : i32, i32
  }
  func.func @transform_7(%arg0: i32, %arg1: i32) -> (i32, i32) {
    %c0_i32 = arith.constant 0 : i32
    %c0_i32_0 = arith.constant 0 : i32
    %c0_i32_1 = arith.constant 0 : i32
    return %c0_i32, %c0_i32_0 : i32, i32
  }
  func.func @transform_8(%arg0: i32, %arg1: i32) -> (i32, i32) {
    %c0_i32 = arith.constant 0 : i32
    %c0_i32_0 = arith.constant 0 : i32
    %c0_i32_1 = arith.constant 0 : i32
    return %c0_i32, %c0_i32_0 : i32, i32
  }
  func.func @transform_9(%arg0: i32, %arg1: i32) -> (i32, i32, i32) {
    %c0_i32 = arith.constant 0 : i32
    %c0_i32_0 = arith.constant 0 : i32
    %c0_i32_1 = arith.constant 0 : i32
    return %arg0, %c0_i32, %c0_i32_0 : i32, i32, i32
  }
}

</mosaic_0001>

<bundles_post_ra>
// kernel: tpu_custom_call.1
= control target key start
LH: loop header
LB: loop body
LE: loop exit
PB: predicated region body
PF: predicated region fallthrough
CT: control target
= control target key end

     0   :  { %s2223_s0 = inlined_call_operand.<no memory space> [shape: f32[1], index: 0, kind: input, shape index: {}]   ;;  %s2224_s1 = inlined_call_operand.<no memory space> [shape: f32[1], index: 1, kind: input, shape index: {}]   ;;  %s2225_s2 = inlined_call_operand.vmem [shape: f32[2,16,8], index: 2, kind: input, shape index: {}]   ;;  %s2226_s3 = inlined_call_operand.vmem [shape: f32[2,16,8], index: 3, kind: input, shape index: {}]   ;;  %s2227_s4 = inlined_call_operand.vmem [shape: f32[2,16,8], index: 4, kind: input, shape index: {}]   ;;  %s2228_s5 = inlined_call_operand.vmem [shape: f32[2,16,16], index: 5, kind: input, shape index: {}]   ;;  %s2229_s6 = inlined_call_operand.vmem [shape: f32[32,8], index: 6, kind: input, shape index: {}]   ;;  %s2230_s7 = inlined_call_operand.vmem [shape: f32[96,1], index: 7, kind: input, shape index: {}]   ;;  %s2231_s8 = inlined_call_operand.vmem [shape: f32[32,32], index: 8, kind: input, shape index: {}]   ;;  %s2232_s9 = inlined_call_operand.hbm [shape: f32[2,2,16], index: 9, kind: output, shape index: {}]  }
   0x1   :  { %14 = sst [smem:[#allocation4]] %s2223_s0 }
   0x2   :  { %15 = sst [smem:[#allocation5]] %s2224_s1 }
   0x3   :  { %16 = vsyncpa [#allocation7], 0 }
   0x4   :  { %18 = vsyncpa [#allocation7 + $0x1], 0  ;;  %s1910_s13 = smov 0   ;;  %s1912_s14 = smov 0  }
   0x5   :  { %s1914_s15 = smov 0   ;;  %s1916_s16 = smov 0  }
   0x6   :  { %s1918_s17 = smov 0   ;;  %s1920_s18 = smov 0  }
   0x7 LB: > { %s1496_s0 = sadd.s32 4294967295, %s1849_s18   ;;  %s1497_s1 = sadd.s32 4294967294, %s1849_s18   ;;  %s1849_s18 = sphi %s1920_s18, %s24_s18   ;;  %s1845_s17 = sphi %s1918_s17, %s2241_s17   ;;  %s1841_s16 = sphi %s1916_s16, %s2240_s16   ;;  %s1837_s15 = sphi %s1914_s15, %s2239_s15   ;;  %s1833_s14 = sphi %s1912_s14, %s2238_s14   ;;  %s1829_s13 = sphi %s1910_s13, %s2237_s13  }
   0x8   : > { %s36_s19 = sadd.s32 1, %s1845_s17  ;;  %s260_s20 = sadd.s32 1, %s1837_s15 }
   0x9   : > { %p38_p0 = scmp.ge.s32.totalorder %s36_s19, 2  ;;  %p270_p1 = scmp.ne.s32.totalorder %s1837_s15, %s1833_s14 }
   0xa   : > { %p271_p2 = scmp.eq.s32.totalorder %s1496_s0, 1  ;;  %p276_p3 = scmp.ne.s32.totalorder %s1833_s14, %s1829_s13 }
   0xb   : > { %s2243_s19 = smov (%p38_p0, %s36_s19), 0  ;;  %p277_p5 = scmp.eq.s32.totalorder %s1497_s1, 1 }
   0xc   : > { %p1950_p4 = por %p271_p2, %p270_p1  ;;  %s257_s22 = ssub.s32 %s1845_s17, %s2243_s19 }
   0xd   : > { %p1500_p6 = scmp.ge.s32.totalorder %s1849_s18, 1  ;;  %p258_p7 = scmp.eq.s32.totalorder %s257_s22, 0 }
   0xe   : > { %p1957_p8 = por %p277_p5, %p276_p3  ;;  %p360_p9 = scmp.lt.s32.totalorder %s1849_s18, 3 }
   0xf   : > { %s1963_s24 = scalar_select %p258_p7, %s1837_s15, %s260_s20  }
  0x10   : > { %p361_p10 = pnand %p1500_p6, %p360_p9 }
  0x11   : > { %p427_p11 = scmp.lt.s32.totalorder (!%p361_p10), %s1841_s16, 1  ;;  %vm487_vm0 = vcmask (!%p361_p10), 64512   ;;  %v481_v0 = vld [vmem:[%s2229_s6] sm:$0xff] (!%p361_p10)  ;;  %v482_v11 = vld [vmem:[%s2229_s6 + $0x8] sm:$0xff] (!%p361_p10)  ;;  %v483_v12 = vld [vmem:[%s2229_s6 + $0x10] sm:$0xff] (!%p361_p10)  ;;  %vm468_vm2 = vcmask (!%p361_p10), 130048  }
  0x12   : > { %364 = sbr.rel (%p361_p10) target bundleno = 1055 (0x41f), region = 56  ;;  %1602 = vmatprep.mubr.msk.f32.mxu0 (!%p361_p10), %vm487_vm0, %v481_v0  ;;  %1612 = vmatprep.mubr.msk.f32.mxu1 (!%p361_p10), %vm487_vm0, %v481_v0  ;;  %vm1980_vm1 = vmpackc.low (!%p361_p10), %vm487_vm0, %vm487_vm0  ;;  %v484_v13 = vld [vmem:[%s2229_s6 + $0x18] sm:$0xff] (!%p361_p10)  ;;  %v1024_v17 = vld [vmem:[%s2230_s7] sm:$0xff] (!%p361_p10)  ;;  %v1851_v19 = vmov (!%p361_p10), 0   ;;  %v1852_v22 = vmov (!%p361_p10), 0.0   ;;  %s1010_s30 = sld [smem:[#allocation4]] (!%p361_p10) }
  0x13   : > { %vm1683_vm3 = vmpackc.low (!%p361_p10), %vm468_vm2, %vm468_vm2  ;;  %v1026_v18 = vld [vmem:[%s2230_s7 + $0x10] sm:$0xff] (!%p361_p10)  ;;  %1753 = vset.pattern.permute.xlu0 (!%p361_p10), %v1851_v19  ;;  %1754 = vset.pattern.permute.xlu1 (!%p361_p10), %v1851_v19  ;;  %v1025_v20 = vld [vmem:[%s2230_s7 + $0x8] sm:$0xff] (!%p361_p10)  ;;  %470 = vst.msk [vmem:[#allocation3 + $0x8] sm:$0xff] (!%p361_p10), %vm468_vm2, %v1852_v22  ;;  %vm1197_vm8 = vcmask (!%p361_p10), 261120   ;;  %s423_s29 = sand.u32 (!%p361_p10), 1, %s1833_s14   ;;  %s1551_s11 = sshll.u32 (!%p361_p10), %s1841_s16, 5 }
  0x14   : > { %1038 = vperm.xlu0 (!%p361_p10), %1753, %v1024_v17   ;;  %1048 = vperm.xlu1 (!%p361_p10), %1754, %v1026_v18   ;;  %v1027_v21 = vld [vmem:[%s2230_s7 + $0x18] sm:$0xff] (!%p361_p10)  ;;  %469 = vst.msk [vmem:[#allocation3] sm:$0xff] (!%p361_p10), %vm468_vm2, %v1852_v22  ;;  %471 = vst.msk [vmem:[#allocation3 + $0x10] sm:$0xff] (!%p361_p10), %vm468_vm2, %v1852_v22 }
  0x15   : > { %472 = vst.msk [vmem:[#allocation3 + $0x18] sm:$0xff] (!%p361_p10), %vm468_vm2, %v1852_v22  ;;  %473 = vst.msk [vmem:[#allocation3 + $0x20] sm:$0xff] (!%p361_p10), %vm468_vm2, %v1852_v22 }
  0x16   : > { %474 = vst.msk [vmem:[#allocation3 + $0x28] sm:$0xff] (!%p361_p10), %vm468_vm2, %v1852_v22  ;;  %475 = vst.msk [vmem:[#allocation3 + $0x30] sm:$0xff] (!%p361_p10), %vm468_vm2, %v1852_v22 }
  0x17   : > { %476 = vst.msk [vmem:[#allocation3 + $0x38] sm:$0xff] (!%p361_p10), %vm468_vm2, %v1852_v22  ;;  %477 = vst.msk [vmem:[#allocation3 + $0x40] sm:$0xff] (!%p361_p10), %vm468_vm2, %v1852_v22 }
  0x18   : > { %1043 = vperm.xlu0 (!%p361_p10), %1753, %v1025_v20   ;;  %1053 = vperm.xlu1 (!%p361_p10), %1754, %v1027_v21   ;;  %478 = vst.msk [vmem:[#allocation3 + $0x48] sm:$0xff] (!%p361_p10), %vm468_vm2, %v1852_v22  ;;  %479 = vst.msk [vmem:[#allocation3 + $0x50] sm:$0xff] (!%p361_p10), %vm468_vm2, %v1852_v22 }
  0x19   : > { %s428_s27 = scalar_select %p427_p11, %s1841_s16, 1  ;;  %480 = vst.msk [vmem:[#allocation3 + $0x58] sm:$0xff] %vm468_vm2, %v1852_v22 }
  0x1a   : > { %v793_v47 = vld [vmem:[#allocation3 + $0x8] sm:$0xff]  ;;  %s1356_s16 = scalar_lea.sflag [#allocation7], %s423_s29 }
  0x1b   : > { %s1972_s28 = sshll.u32 %s428_s27, 4  ;;  %v792_v48 = vld [vmem:[#allocation3] sm:$0xff]  ;;  %v794_v55 = vld [vmem:[#allocation3 + $0x10] sm:$0xff] }
  0x1c   : > { %s434_s10 = scalar_lea.vmem %s2225_s2, %s1972_s28  ;;  %s444_s0 = scalar_lea.vmem %s2226_s3, %s1972_s28  ;;  %v795_v53 = vld [vmem:[#allocation3 + $0x18] sm:$0xff]  ;;  %v796_v62 = vld [vmem:[#allocation3 + $0x20] sm:$0xff] }
  0x1d   : > { %v485_v2 = vld [vmem:[%s434_s10] sm:$0xff]  ;;  %v486_v3 = vld [vmem:[%s434_s10 + $0x8] sm:$0xff]  ;;  %s454_s22 = scalar_lea.vmem %s2227_s4, %s1972_s28  ;;  %s1501_s10 = sshll.u32 %s423_s29, 1 }
  0x1e   : > { %v596_v4 = vld [vmem:[%s444_s0] sm:$0xff]  ;;  %v1664_v5 = vpack.c.bf16 %v486_v3, %v485_v2  ;;  %v597_v6 = vld [vmem:[%s444_s0 + $0x8] sm:$0xff]  ;;  %s463_s0 = scalar_lea.vmem %s2228_s5, %s1972_s28  ;;  %v2081_v3 = vstv %s1010_s30  ;;  %s1011_s30 = sld [smem:[#allocation5]] }
  0x1f   : > { %v693_v7 = vld [vmem:[%s454_s22] sm:$0xff]  ;;  %v694_v8 = vld [vmem:[%s454_s22 + $0x8] sm:$0xff]  ;;  %v1670_v9 = vpack.c.bf16 %v597_v6, %v596_v4  ;;  %v799_v6 = vld [vmem:[#allocation3 + $0x38] sm:$0xff]  ;;  %s425_s12 = scalar_lea.vmem [#allocation6], %s1501_s10  ;;  %s2176_s22 = scalar_lea.hbm %s2232_s9, %s1551_s11 }
  0x20   : > { %v1676_v10 = vpack.c.bf16 %v694_v8, %v693_v7  ;;  %1666 = vmatprep.subr.msk.bf16.mxu0 %vm1980_vm1, %v1664_v5  ;;  %v790_v14 = vld [vmem:[%s463_s0] sm:$0xff]  ;;  %v791_v15 = vld [vmem:[%s463_s0 + $0x8] sm:$0xff]  ;;  %s1369_s0 = sshll.u32 %s425_s12, 4  ;;  %s1853_s28 = smov [#allocation6]   ;;  %s2178_s0 = int_to_ptr.vmem [resolvable:$true] %s1369_s0 }
  0x21   : > { %1669 = vmatpush3.bf16.xpose.msk.msra.mxu0 %vm1980_vm1, %v1664_v5  ;;  %1672 = vmatprep.subr.msk.bf16.mxu1 %vm1980_vm1, %v1670_v9  ;;  %v1682_v16 = vpack.c.bf16 %v791_v15, %v790_v14  ;;  %v797_v61 = vld [vmem:[#allocation3 + $0x28] sm:$0xff]  ;;  %s1771_s25 = scalar_lea.vmem %s2178_s0, 32  ;;  %s1775_s26 = sshll.u32 %s1853_s28, 4  ;;  %s1776_s26 = int_to_ptr.vmem [resolvable:$false] %s1775_s26 }
  0x22   : > { %1675 = vmatpush3.bf16.xpose.msk.msra.mxu1 %vm1980_vm1, %v1670_v9  ;;  %1678 = vmatprep.subr.msk.bf16.mxu0 %vm1980_vm1, %v1676_v10  ;;  %v798_v9 = vld [vmem:[#allocation3 + $0x30] sm:$0xff]  ;;  %v801_v19 = vld [vmem:[#allocation3 + $0x48] sm:$0xff]  ;;  %p1772_p12 = scmp.ne.s32.totalorder %s2178_s0, %s1771_s25  ;;  %s1777_s27 = scalar_lea.vmem %s1776_s26, 64 }
  0x23   : > { %1684 = vmatprep.subr.msk.bf16.mxu1 %vm1683_vm3, %v1682_v16  ;;  %p1778_p1 = scmp.lt.s32.totalorder %s2178_s0, %s1776_s26  ;;  %p1779_p2 = scmp.lt.s32.totalorder %s1777_s27, %s1771_s25 }
  0x24   : > { %p1773_p13 = pnand %p1772_p12, %p1950_p4 }
  0x25   : > { %p1780_p3 = por %p1779_p2, %p1778_p1 }
  0x26   : > { %p1774_p0 = pneg %p1773_p13 }
  0x28   : > { %1603 = vmatmul.mubr.msk.f32.vlgmr.msra.gmra.mrb[0].mxu0 %vm487_vm0, %v482_v11  ;;  %p1781_p5 = pnand %p1780_p3, %p1774_p0 }
  0x29   : > { %1605 = vmatprep.mubr.msk.f32.mxu0 %vm487_vm0, %v483_v12  ;;  %1613 = vmatmul.mubr.msk.f32.vlgmr.msra.gmra.mrb[0].mxu1 %vm487_vm0, %v482_v11 }
  0x2a   : > { %1681 = vmatpush3.bf16.xpose.msk.msra.mxu0 %vm1980_vm1, %v1676_v10  ;;  %1615 = vmatprep.mubr.msk.f32.mxu1 %vm487_vm0, %v483_v12  ;;  %vm1334_vm1 = vcmask 122880  }
  0x2b   : > { %1687 = vmatpush3.bf16.xpose.msk.msra.mxu1 %vm1683_vm3, %v1682_v16 }
  0x2c   : > { %1606 = vmatmul.mubr.msk.f32.gmra.mrb[2].mxu0 %vm487_vm0, %v484_v13 }
  0x2d   : > { %1616 = vmatmul.mubr.msk.f32.gmra.mrb[2].mxu1 %vm487_vm0, %v484_v13  ;;  %1622 = vmatprep.mubr.msk.f32.mxu0 %vm487_vm0, %v481_v0 }
  0x31   : > { %1623 = vmatmul.mubr.msk.f32.vlgmr.msra.gmra.mrb[4].mxu0 %vm487_vm0, %v482_v11 }
  0x32   : > { %1625 = vmatprep.mubr.msk.f32.mxu0 %vm487_vm0, %v483_v12 }
  0x35   : > { %1626 = vmatmul.mubr.msk.f32.gmra.mrb[6].mxu0 %vm487_vm0, %v484_v13 }
  0x93   : > { %v1039_v54 = vpop.permute.xlu0 %1038  ;;  %v1049_v60 = vpop.permute.xlu1 %1048 }
  0x97   : > { %v1044_v63 = vpop.permute.xlu0 %1043  ;;  %v1054_v11 = vpop.permute.xlu1 %1053 }
  0xfb   : > { %v1604_v23 = vpop.f32.mrb[0].mxu0 }
  0xfc   : > { %593 = vst.msk [vmem:[#allocation2 + $0x8] sm:$0xff] %vm468_vm2, %v1604_v23  ;;  %v572_v24 = vpop.f32.mrb[1].mxu0  ;;  %v1614_v25 = vpop.f32.mrb[0].mxu1  ;;  %v800_v23 = vld [vmem:[#allocation3 + $0x40] sm:$0xff] }
  0xfd   : > { %592 = vst.msk [vmem:[#allocation2] sm:$0xff] %vm468_vm2, %v572_v24  ;;  %690 = vst.msk [vmem:[#allocation2 + $0x28] sm:$0xff] %vm468_vm2, %v1614_v25  ;;  %v670_v26 = vpop.f32.mrb[1].mxu1 }
  0xfe   : > { %689 = vst.msk [vmem:[#allocation2 + $0x20] sm:$0xff] %vm468_vm2, %v670_v26 }
  0xff   : > { %v1607_v27 = vpop.f32.mrb[2].mxu0 }
 0x100   : > { %595 = vst.msk [vmem:[#allocation2 + $0x18] sm:$0xff] %vm468_vm2, %v1607_v27  ;;  %v582_v28 = vpop.f32.mrb[3].mxu0  ;;  %v1617_v29 = vpop.f32.mrb[2].mxu1 }
 0x101   : > { %594 = vst.msk [vmem:[#allocation2 + $0x10] sm:$0xff] %vm468_vm2, %v582_v28  ;;  %692 = vst.msk [vmem:[#allocation2 + $0x38] sm:$0xff] %vm468_vm2, %v1617_v29  ;;  %v680_v30 = vpop.f32.mrb[3].mxu1 }
 0x102   : > { %691 = vst.msk [vmem:[#allocation2 + $0x30] sm:$0xff] %vm468_vm2, %v680_v30 }
 0x103   : > { %v805_v33 = vld [vmem:[#allocation2 + $0x8] sm:$0xff] }
 0x104   : > { %v804_v31 = vld [vmem:[#allocation2] sm:$0xff]  ;;  %v1624_v32 = vpop.f32.mrb[4].mxu0  ;;  %v809_v40 = vld [vmem:[#allocation2 + $0x28] sm:$0xff] }
 0x105   : > { %1632 = vmatprep.mubr.msk.f32.mxu1 %vm468_vm2, %v804_v31  ;;  %787 = vst.msk [vmem:[#allocation2 + $0x48] sm:$0xff] %vm468_vm2, %v1624_v32  ;;  %v767_v34 = vpop.f32.mrb[5].mxu0  ;;  %v808_v36 = vld [vmem:[#allocation2 + $0x20] sm:$0xff] }
 0x106   : > { %1633 = vmatmul.mubr.msk.f32.vlgmr.msra.gmra.mrb[4].mxu1 %vm468_vm2, %v805_v33  ;;  %786 = vst.msk [vmem:[#allocation2 + $0x40] sm:$0xff] %vm468_vm2, %v767_v34 }
 0x107   : > { %v807_v38 = vld [vmem:[#allocation2 + $0x18] sm:$0xff] }
 0x108   : > { %v806_v35 = vld [vmem:[#allocation2 + $0x10] sm:$0xff]  ;;  %v1627_v37 = vpop.f32.mrb[6].mxu0  ;;  %v811_v42 = vld [vmem:[#allocation2 + $0x38] sm:$0xff] }
 0x109   : > { %1635 = vmatprep.mubr.msk.f32.mxu1 %vm468_vm2, %v806_v35  ;;  %789 = vst.msk [vmem:[#allocation2 + $0x58] sm:$0xff] %vm468_vm2, %v1627_v37  ;;  %v777_v39 = vpop.f32.mrb[7].mxu0  ;;  %v810_v41 = vld [vmem:[#allocation2 + $0x30] sm:$0xff] }
 0x10a   : > { %1636 = vmatmul.mubr.msk.f32.gmra.mrb[6].mxu1 %vm468_vm2, %v807_v38  ;;  %788 = vst.msk [vmem:[#allocation2 + $0x50] sm:$0xff] %vm468_vm2, %v777_v39  ;;  %v1028_v38 = vld [vmem:[%s2230_s7 + $0x20] sm:$0xff] }
 0x10b   : > { %1638 = vmatprep.mubr.msk.f32.mxu1 %vm468_vm2, %v808_v36  ;;  %v1032_v39 = vld [vmem:[%s2230_s7 + $0x40] sm:$0xff] }
 0x10c   : > { %v813_v44 = vld [vmem:[#allocation2 + $0x48] sm:$0xff] }
 0x10d   : > { %v812_v43 = vld [vmem:[#allocation2 + $0x40] sm:$0xff] }
 0x10e   : > { %1639 = vmatmul.mubr.msk.f32.gmra.mrb[8].mxu1 %vm468_vm2, %v809_v40 }
 0x10f   : > { %1641 = vmatprep.mubr.msk.f32.mxu1 %vm468_vm2, %v810_v41  ;;  %v802_v41 = vld [vmem:[#allocation3 + $0x50] sm:$0xff] }
 0x110   : > { %v815_v46 = vld [vmem:[#allocation2 + $0x58] sm:$0xff] }
 0x111   : > { %v814_v45 = vld [vmem:[#allocation2 + $0x50] sm:$0xff] }
 0x112   : > { %1642 = vmatmul.mubr.msk.f32.gmra.mrb[10].mxu1 %vm468_vm2, %v811_v42 }
 0x113   : > { %1644 = vmatprep.mubr.msk.f32.mxu1 %vm468_vm2, %v812_v43 }
 0x116   : > { %1645 = vmatmul.mubr.msk.f32.gmra.mrb[12].mxu1 %vm468_vm2, %v813_v44  ;;  %v1033_v44 = vld [vmem:[%s2230_s7 + $0x48] sm:$0xff] }
 0x117   : > { %1647 = vmatprep.mubr.msk.f32.mxu1 %vm468_vm2, %v814_v45  ;;  %v803_v45 = vld [vmem:[#allocation3 + $0x58] sm:$0xff] }
 0x11a   : > { %1648 = vmatmul.mubr.msk.f32.gmra.mrb[14].mxu1 %vm468_vm2, %v815_v46 }
 0x1d9   : > { %v1634_v49 = vpop.f32.mrb[4].mxu1 }
 0x1da   : > { %v984_v50 = vadd.f32 %v1634_v49, %v793_v47  ;;  %v924_v51 = vpop.f32.mrb[5].mxu1  ;;  %v1034_v47 = vld [vmem:[%s2230_s7 + $0x50] sm:$0xff]  ;;  %v1035_v49 = vld [vmem:[%s2230_s7 + $0x58] sm:$0xff] }
 0x1db   : > { %v983_v52 = vadd.f32 %v924_v51, %v792_v48  ;;  %v1029_v48 = vld [vmem:[%s2230_s7 + $0x28] sm:$0xff]  ;;  %v1031_v51 = vld [vmem:[%s2230_s7 + $0x38] sm:$0xff] }
 0x1dc   : > { %996 = vst.msk [vmem:[#allocation3 + $0x8] sm:$0xff] %vm468_vm2, %v984_v50  ;;  %v1030_v50 = vld [vmem:[%s2230_s7 + $0x30] sm:$0xff] }
 0x1dd   : > { %995 = vst.msk [vmem:[#allocation3] sm:$0xff] %vm468_vm2, %v983_v52  ;;  %v1637_v56 = vpop.f32.mrb[6].mxu1  ;;  %v1193_v52 = vld [vmem:[%s2231_s8] sm:$0xff] }
 0x1de   : > { %v986_v57 = vadd.f32 %v1637_v56, %v795_v53  ;;  %v934_v58 = vpop.f32.mrb[7].mxu1  ;;  %1658 = vmatprep.mubr.msk.f32.mxu0 %vm1197_vm8, %v1193_v52 }
 0x1df   : > { %v985_v59 = vadd.f32 %v934_v58, %v794_v55 }
 0x1e0   : > { %998 = vst.msk [vmem:[#allocation3 + $0x18] sm:$0xff] %vm468_vm2, %v986_v57 }
 0x1e1   : > { %997 = vst.msk [vmem:[#allocation3 + $0x10] sm:$0xff] %vm468_vm2, %v985_v59  ;;  %v1640_v0 = vpop.f32.mrb[8].mxu1 }
 0x1e2   : > { %v988_v1 = vadd.f32 %v1640_v0, %v797_v61  ;;  %v944_v2 = vpop.f32.mrb[9].mxu1 }
 0x1e3   : > { %v1013_v4 = vld [vmem:[#allocation3 + $0x8] sm:$0xff]  ;;  %v987_v5 = vadd.f32 %v944_v2, %v796_v62 }
 0x1e4   : > { %v1012_v7 = vld [vmem:[#allocation3] sm:$0xff]  ;;  %v1097_v8 = vadd.f32 %v1044_v63, %v1013_v4  ;;  %1000 = vst.msk [vmem:[#allocation3 + $0x28] sm:$0xff] %vm468_vm2, %v988_v1 }
 0x1e5   : > { %v1096_v10 = vadd.f32 %v1039_v54, %v1012_v7  ;;  %999 = vst.msk [vmem:[#allocation3 + $0x20] sm:$0xff] %vm468_vm2, %v987_v5  ;;  %v1643_v12 = vpop.f32.mrb[10].mxu1 }
 0x1e6   : > { %v1122_v13 = vmul.f32 %v2081_v3, %v1097_v8  ;;  %vm1109_vm4 = vcmp.gt.f32.partialorder %v1097_v8, 0.0  ;;  %v990_v14 = vadd.f32 %v1643_v12, %v799_v6  ;;  %v954_v15 = vpop.f32.mrb[11].mxu1 }
 0x1e7   : > { %v1121_v16 = vmul.f32 %v2081_v3, %v1096_v10  ;;  %v1015_v17 = vld [vmem:[#allocation3 + $0x18] sm:$0xff]  ;;  %vm1108_vm5 = vcmp.gt.f32.partialorder %v1096_v10, 0.0  ;;  %v989_v18 = vadd.f32 %v954_v15, %v798_v9 }
 0x1e8   : > { %v1014_v20 = vld [vmem:[#allocation3 + $0x10] sm:$0xff]  ;;  %v1099_v21 = vadd.f32 %v1054_v11, %v1015_v17  ;;  %v2087_v22 = vsel %vm1109_vm4, %v1097_v8, %v1122_v13  ;;  %1002 = vst.msk [vmem:[#allocation3 + $0x38] sm:$0xff] %vm468_vm2, %v990_v14 }
 0x1e9   : > { %v1098_v24 = vadd.f32 %v1049_v60, %v1014_v20  ;;  %v1156_v25 = vsel %vm468_vm2, %v2087_v22, 0.0  ;;  %v2092_v26 = vsel %vm1108_vm5, %v1096_v10, %v1121_v16  ;;  %1001 = vst.msk [vmem:[#allocation3 + $0x30] sm:$0xff] %vm468_vm2, %v989_v18  ;;  %v1646_v27 = vpop.f32.mrb[12].mxu1  ;;  %v1194_v16 = vld [vmem:[%s2231_s8 + $0x8] sm:$0xff]  ;;  %v1195_v17 = vld [vmem:[%s2231_s8 + $0x10] sm:$0xff]  ;;  %v1196_v18 = vld [vmem:[%s2231_s8 + $0x18] sm:$0xff] }
 0x1ea   : > { %1157 = vadd.xlane.f32.xlu1 %v1156_v25  ;;  %v1153_v28 = vsel %vm468_vm2, %v2092_v26, 0.0  ;;  %v992_v29 = vadd.f32 %v1646_v27, %v801_v19  ;;  %v964_v30 = vpop.f32.mrb[13].mxu1  ;;  %v1124_v32 = vmul.f32 %v2081_v3, %v1099_v21  ;;  %vm1111_vm7 = vcmp.gt.f32.partialorder %v1099_v21, 0.0 }
 0x1eb   : > { %v1123_v31 = vmul.f32 %v2081_v3, %v1098_v24  ;;  %1154 = vadd.xlane.f32.xlu0 %v1153_v28  ;;  %vm1110_vm6 = vcmp.gt.f32.partialorder %v1098_v24, 0.0  ;;  %v991_v33 = vadd.f32 %v964_v30, %v800_v23 }
 0x1ec   : > { %1004 = vst.msk [vmem:[#allocation3 + $0x48] sm:$0xff] %vm468_vm2, %v992_v29  ;;  %v2105_v36 = vsel %vm1111_vm7, %v1099_v21, %v1124_v32 }
 0x1ed   : > { %v2100_v34 = vsel %vm1110_vm6, %v1098_v24, %v1123_v31  ;;  %1003 = vst.msk [vmem:[#allocation3 + $0x40] sm:$0xff] %vm468_vm2, %v991_v33  ;;  %v1162_v37 = vsel %vm468_vm2, %v2105_v36, 0.0  ;;  %v1649_v40 = vpop.f32.mrb[14].mxu1  ;;  %v1017_v31 = vld [vmem:[#allocation3 + $0x28] sm:$0xff] }
 0x1ee   : > { %v1159_v35 = vsel %vm468_vm2, %v2100_v34, 0.0  ;;  %v974_v42 = vpop.f32.mrb[15].mxu1  ;;  %v994_v46 = vadd.f32 %v1649_v40, %v803_v45 }
 0x1ef   : > { %1160 = vadd.xlane.f32.xlu0 %v1159_v35  ;;  %v993_v43 = vadd.f32 %v974_v42, %v802_v41  ;;  %v1016_v35 = vld [vmem:[#allocation3 + $0x20] sm:$0xff]  ;;  %v1019_v41 = vld [vmem:[#allocation3 + $0x38] sm:$0xff] }
 0x1f0   : > { %1006 = vst.msk [vmem:[#allocation3 + $0x58] sm:$0xff] %vm468_vm2, %v994_v46 }
 0x1f1   : > { %1005 = vst.msk [vmem:[#allocation3 + $0x50] sm:$0xff] %vm468_vm2, %v993_v43 }
 0x1f3   : > { %1163 = vadd.xlane.f32.xlu0 %v1162_v37  ;;  %v1021_v33 = vld [vmem:[#allocation3 + $0x48] sm:$0xff] }
 0x1f4   : > { %v1020_v32 = vld [vmem:[#allocation3 + $0x40] sm:$0xff] }
 0x1f7   : > { %v1023_v46 = vld [vmem:[#allocation3 + $0x58] sm:$0xff] }
 0x1fb   : > { %1058 = vperm.xlu1 %1754, %v1028_v38  }
 0x1ff   : > { %1078 = vperm.xlu1 %1754, %v1032_v39   ;;  %v1018_v39 = vld [vmem:[#allocation3 + $0x30] sm:$0xff] }
 0x203   : > { %1083 = vperm.xlu1 %1754, %v1033_v44   ;;  %v1022_v44 = vld [vmem:[#allocation3 + $0x50] sm:$0xff] }
 0x207   : > { %1088 = vperm.xlu1 %1754, %v1034_v47  }
 0x209   : > { %1063 = vperm.xlu0 %1753, %v1029_v48  }
 0x20b   : > { %1093 = vperm.xlu1 %1754, %v1035_v49  }
 0x20d   : > { %1068 = vperm.xlu0 %1753, %v1030_v50  }
 0x211   : > { %1073 = vperm.xlu0 %1753, %v1031_v51  }
 0x277   : > { %v1158_v53 = vpop.xlane.xlu1 %1157 }
 0x278   : > { %v1543_v54 = vmul.f32 -0.0625, %v1158_v53  ;;  %v1155_v55 = vpop.xlane.xlu0 %1154 }
 0x279   : > { %v1542_v56 = vmul.f32 -0.0625, %v1155_v55 }
 0x27a   : > { %v1175_v57 = vmul.f32 1.442695, %v1543_v54 }
 0x27b   : > { %v1173_v58 = vmul.f32 1.442695, %v1542_v56  ;;  %v1059_v24 = vpop.permute.xlu1 %1058 }
 0x27c   : > { %1755 = vpow2.f32 %v1175_v57  ;;  %v1161_v59 = vpop.xlane.xlu0 %1160  ;;  %v1100_v43 = vadd.f32 %v1059_v24, %v1016_v35 }
 0x27d   : > { %1757 = vpow2.f32 %v1173_v58  ;;  %v1544_v60 = vmul.f32 -0.0625, %v1161_v59 }
 0x27e   : > { %v1125_v54 = vmul.f32 %v2081_v3, %v1100_v43  ;;  %vm1112_vm12 = vcmp.gt.f32.partialorder %v1100_v43, 0.0 }
 0x27f   : > { %v1177_v61 = vmul.f32 1.442695, %v1544_v60  ;;  %v1079_v25 = vpop.permute.xlu1 %1078 }
 0x280   : > { %v1164_v62 = vpop.xlane.xlu0 %1163  ;;  %v1104_v38 = vadd.f32 %v1079_v25, %v1020_v32 }
 0x281   : > { %1759 = vpow2.f32 %v1177_v61  ;;  %v1545_v63 = vmul.f32 -0.0625, %v1164_v62  ;;  %v1137_v62 = vsel %vm1112_vm12, %v1100_v43, %v1125_v54 }
 0x282   : > { %v1129_v50 = vmul.f32 %v2081_v3, %v1104_v38  ;;  %vm1116_vm10 = vcmp.gt.f32.partialorder %v1104_v38, 0.0 }
 0x283   : > { %v1179_v0 = vmul.f32 1.442695, %v1545_v63  ;;  %v1084_v28 = vpop.permute.xlu1 %1083 }
 0x284   : > { %v1105_v42 = vadd.f32 %v1084_v28, %v1021_v33  ;;  %v1141_v58 = vsel %vm1116_vm10, %v1104_v38, %v1129_v50 }
 0x285   : > { %1761 = vpow2.f32 %v1179_v0  ;;  %v1145_v0 = vadd.f32 %v1141_v58, %v1137_v62 }
 0x286   : > { %v1756_v1 = vpop.eup %1755  ;;  %v1130_v51 = vmul.f32 %v2081_v3, %v1105_v42  ;;  %vm1117_vm11 = vcmp.gt.f32.partialorder %v1105_v42, 0.0 }
 0x287   : > { %v1758_v2 = vpop.eup %1757  ;;  %v1182_v4 = vadd.f32 1.0, %v1756_v1  ;;  %v1089_v30 = vpop.permute.xlu1 %1088 }
 0x288   : > { %v1181_v5 = vadd.f32 1.0, %v1758_v2  ;;  %v1064_v27 = vpop.permute.xlu0 %1063  ;;  %v1106_v52 = vadd.f32 %v1089_v30, %v1022_v44  ;;  %v1142_v59 = vsel %vm1117_vm11, %v1105_v42, %v1130_v51 }
 0x289   : > { %1763 = vrcp.f32 %v1182_v4  ;;  %v1101_v37 = vadd.f32 %v1064_v27, %v1017_v31 }
 0x28a   : > { %1765 = vrcp.f32 %v1181_v5  ;;  %v1131_v60 = vmul.f32 %v2081_v3, %v1106_v52  ;;  %vm1118_vm15 = vcmp.gt.f32.partialorder %v1106_v52, 0.0 }
 0x28b   : > { %v1760_v6 = vpop.eup %1759  ;;  %v1094_v45 = vpop.permute.xlu1 %1093  ;;  %v1126_v47 = vmul.f32 %v2081_v3, %v1101_v37  ;;  %vm1113_vm9 = vcmp.gt.f32.partialorder %v1101_v37, 0.0 }
 0x28c   : > { %v1183_v7 = vadd.f32 1.0, %v1760_v6  ;;  %v1069_v29 = vpop.permute.xlu0 %1068  ;;  %v1107_v53 = vadd.f32 %v1094_v45, %v1023_v46  ;;  %v1143_v5 = vsel %vm1118_vm15, %v1106_v52, %v1131_v60 }
 0x28d   : > { %v1102_v48 = vadd.f32 %v1069_v29, %v1018_v39  ;;  %v1138_v55 = vsel %vm1113_vm9, %v1101_v37, %v1126_v47  ;;  %v1332_v47 = vstv %s1011_s30 }
 0x28e   : > { %1767 = vrcp.f32 %v1183_v7  ;;  %v1132_v61 = vmul.f32 %v2081_v3, %v1107_v53  ;;  %vm1119_vm0 = vcmp.gt.f32.partialorder %v1107_v53, 0.0  ;;  %v1146_v63 = vadd.f32 %v1142_v59, %v1138_v55 }
 0x28f   : > { %v1762_v8 = vpop.eup %1761  ;;  %v1127_v56 = vmul.f32 %v2081_v3, %v1102_v48  ;;  %vm1114_vm13 = vcmp.gt.f32.partialorder %v1102_v48, 0.0 }
 0x290   : > { %v1184_v9 = vadd.f32 1.0, %v1762_v8  ;;  %v1074_v40 = vpop.permute.xlu0 %1073  ;;  %v1144_v4 = vsel %vm1119_vm0, %v1107_v53, %v1132_v61  ;;  %v1150_v6 = vmul.f32 0.5, %v1146_v63 }
 0x291   : > { %v1103_v49 = vadd.f32 %v1074_v40, %v1019_v41  ;;  %v1139_v2 = vsel %vm1114_vm13, %v1102_v48, %v1127_v56 }
 0x292   : > { %1769 = vrcp.f32 %v1184_v9  ;;  %v1147_v8 = vadd.f32 %v1143_v5, %v1139_v2 }
 0x293   : > { %v1764_v10 = vpop.eup %1763  ;;  %v1128_v57 = vmul.f32 %v2081_v3, %v1103_v49  ;;  %vm1115_vm14 = vcmp.gt.f32.partialorder %v1103_v49, 0.0 }
 0x294   : > { %v1766_v11 = vpop.eup %1765 }
 0x295   : > { %v1688_v12 = vpack.c.bf16 %v1764_v10, %v1766_v11  ;;  %v1140_v1 = vsel %vm1115_vm14, %v1103_v49, %v1128_v57  ;;  %v1149_v10 = vmul.f32 0.5, %v1145_v0 }
 0x296   : > { %v1148_v7 = vadd.f32 %v1144_v4, %v1140_v1 }
 0x297   : > { %1689 = vmatprep.subr.bf16.mxu0 %v1688_v12 }
 0x298   : > { %1691 = vmatpush3.bf16.msra.mxu0 %v1688_v12  ;;  %v1768_v13 = vpop.eup %1767 }
 0x29c   : > { %v1770_v14 = vpop.eup %1769 }
 0x29d   : > { %v1692_v15 = vpack.c.bf16 %v1770_v14, %v1768_v13 }
 0x29f   : > { %1693 = vmatprep.subr.bf16.mxu0 %v1692_v15 }
 0x2a0   : > { %1695 = vmatpush3.bf16.msra.mxu0 %v1692_v15  ;;  %v1152_v15 = vmul.f32 0.5, %v1148_v7 }
 0x2a3   : > { %1659 = vmatmul.mubr.msk.f32.vlgmr.msra.gmra.mrb[8].mxu0 %vm1197_vm8, %v1194_v16  ;;  %v1151_v16 = vmul.f32 0.5, %v1147_v8 }
 0x2a4   : > { %1661 = vmatprep.mubr.msk.f32.mxu0 %vm1197_vm8, %v1195_v17 }
 0x2a7   : > { %1662 = vmatmul.mubr.msk.f32.gmra.mrb[10].mxu0 %vm1197_vm8, %v1196_v18 }
 0x376   : > { %v1660_v19 = vpop.f32.mrb[8].mxu0 }
 0x377   : > { %1302 = vperm.xlu1 %1754, %v1660_v19   ;;  %v1276_v20 = vpop.f32.mrb[9].mxu0 }
 0x378   : > { %1297 = vperm.xlu0 %1753, %v1276_v20  }
 0x37a   : > { %v1663_v21 = vpop.f32.mrb[10].mxu0 }
 0x37b   : > { %1312 = vperm.xlu1 %1754, %v1663_v21   ;;  %v1286_v23 = vpop.f32.mrb[11].mxu0 }
 0x37c   : > { %1307 = vperm.xlu0 %1753, %v1286_v23  }
 0x3f6   : > { %v1303_v9 = vpop.permute.xlu1 %1302 }
 0x3f7   : > { %v1316_v11 = vmul.f32 %v1303_v9, %v2087_v22  ;;  %v1337_v12 = vmul.f32 %v1303_v9, %v1150_v6  ;;  %v1298_v13 = vpop.permute.xlu0 %1297 }
 0x3f8   : > { %v1315_v3 = vmul.f32 %v1298_v13, %v2092_v26  ;;  %v1336_v14 = vmul.f32 %v1298_v13, %v1149_v10 }
 0x3f9   : > { %v1320_v17 = vsel %vm468_vm2, %v1316_v11, 0.0  ;;  %v1341_v18 = vsel %vm468_vm2, %v1337_v12, 0.0 }
 0x3fa   : > { %v1319_v19 = vsel %vm468_vm2, %v1315_v3, 0.0  ;;  %v1340_v20 = vsel %vm468_vm2, %v1336_v14, 0.0  ;;  %v1313_v21 = vpop.permute.xlu1 %1312 }
 0x3fb   : > { %v1308_v23 = vpop.permute.xlu0 %1307  ;;  %v1318_v24 = vmul.f32 %v1313_v21, %v2105_v36  ;;  %v1339_v22 = vmul.f32 %v1313_v21, %v1152_v15  ;;  %v1321_v27 = vadd.f32 %v1320_v17, %v1319_v19  ;;  %v1342_v28 = vadd.f32 %v1341_v18, %v1340_v20 }
 0x3fc   : > { %v1317_v25 = vmul.f32 %v1308_v23, %v2100_v34  ;;  %v1338_v26 = vmul.f32 %v1308_v23, %v1151_v16 }
 0x3fd   : > { %v1324_v33 = vsel %vm468_vm2, %v1318_v24, 0.0  ;;  %v1345_v35 = vsel %vm468_vm2, %v1339_v22, 0.0 }
 0x3fe   : > { %v1322_v29 = vsel %vm468_vm2, %v1317_v25, 0.0  ;;  %v1343_v30 = vsel %vm468_vm2, %v1338_v26, 0.0 }
 0x3ff   : > { %v1323_v31 = vadd.f32 %v1322_v29, %v1321_v27  ;;  %v1344_v32 = vadd.f32 %v1343_v30, %v1342_v28 }
 0x401   : > { %v1325_v37 = vadd.f32 %v1324_v33, %v1323_v31  ;;  %v1346_v36 = vadd.f32 %v1345_v35, %v1344_v32 }
 0x403   : > { %v1326_v38 = vrot.slane %v1325_v37, 4  ;;  %v1347_v39 = vrot.slane %v1346_v36, 4 }
 0x405   : > { %v1327_v34 = vadd.f32 %v1326_v38, %v1325_v37  ;;  %v1348_v40 = vadd.f32 %v1347_v39, %v1346_v36 }
 0x407   : > { %v1328_v41 = vrot.slane %v1327_v34, 2  ;;  %v1349_v42 = vrot.slane %v1348_v40, 2 }
 0x409   : > { %v1329_v43 = vadd.f32 %v1328_v41, %v1327_v34  ;;  %v1350_v44 = vadd.f32 %v1349_v42, %v1348_v40 }
 0x40b   : > { %v1330_v45 = vrot.slane %v1329_v43, 1  ;;  %v1351_v46 = vrot.slane %v1350_v44, 1 }
 0x40d   : > { %v1331_v48 = vadd.f32 %v1330_v45, %v1329_v43  ;;  %v1352_v49 = vadd.f32 %v1351_v46, %v1350_v44 }
 0x40f   : > { %v1333_v50 = vadd.f32 %v1332_v47, %v1331_v48  ;;  %v1353_v51 = vadd.f32 %v1352_v49, %v1332_v47 }
 0x411   : > { %1335 = vst.msk [vmem:[%s425_s12] sm:$0x1] %vm1334_vm1, %v1333_v50  ;;  %1354 = vst.msk [vmem:[%s425_s12 + $0x1] sm:$0x1] %vm1334_vm1, %v1353_v51 }
 0x412   : > { %1784 = shalt.err (!%p1781_p5)
}
 0x413   : > { %s1785_s29 = scalar_lea.hbm %s2176_s22, 32  ;;  %s1789_s11 = scalar_lea.hbm %s2232_s9, 64 }
 0x414   : > { %p1786_p6 = scmp.ne.s32.totalorder %s2176_s22, %s1785_s29  ;;  %p1790_p10 = scmp.lt.u32.totalorder %s2176_s22, %s2232_s9 }
 0x415   : > { %p1791_p11 = scmp.lt.u32.totalorder %s1789_s11, %s1785_s29  ;;  %p1793_p13 = scmp.lt.u32.totalorder %s1785_s29, %s2176_s22 }
 0x416   : > { %p1787_p7 = pnand %p1786_p6, %p1950_p4 }
 0x417   : > { %p1792_p12 = por %p1791_p11, %p1790_p10 }
 0x418   : > { %p1788_p9 = pneg %p1787_p7 }
 0x419   : > { %p1794_p0 = por %p1793_p13, %p1792_p12 }
 0x41b   : > { %p1795_p1 = pnand %p1794_p0, %p1788_p9 }
 0x41d   : > { %1798 = shalt.err (!%p1795_p1)
}
 0x41e   : > { %1696 = dma.vmem_to_hbm [thread:$0]  (%p1950_p4), %s2178_s0, 32, %s2176_s22, %s1356_s16  }
 0x41f PF: > { %p1702_p2 = scmp.ge.s32.totalorder %s1849_s18, 2  ;;  %s1381_s20 = sand.u32 1, %s1829_s13  }
 0x420   : > { %s1382_s25 = scalar_lea.sflag [#allocation7], %s1381_s20 }
 0x421   : > { %p1699_p3 = pnand %p1702_p2, %p1957_p8 }
 0x423   : > { %1824 = dma.done.wait (!%p1699_p3), %s1382_s25, 32  }
 0x424   : > { %1826 = vsyncadd (!%p1699_p3), %s1382_s25, 4294967264  ;;  %s24_s18 = sadd.s32 1, %s1849_s18   ;;  %s2237_s13 = smov %s1833_s14 }
 0x425   : > { %p21_p5 = scmp.ge.s32.totalorder %s24_s18, 4   ;;  %s2238_s14 = smov %s1837_s15 }
 0x426   : > { %s2239_s15 = smov %s1963_s24  ;;  %s2240_s16 = smov %s1845_s17 }
 0x427   : > { %s2241_s17 = smov %s2243_s19  ;;  %23 = sbr.rel (!%p21_p5) target bundleno = 7 (0x7), region = 108 }
 0x42e   :  { %1387 = vsyncpa [#allocation7], 1 }
 0x42f   :  { %1389 = vsyncpa [#allocation7 + $0x1], 1 }

</bundles_post_ra>
